<compile_context>
chip_gen: v6e
topology: v6e:2x2x1
jax: 0.10.0
libtpu: 0.0.40
codegen_flags: <defaults>
</compile_context>

<pallas_src>
import jax
import jax.numpy as jnp
from jax.experimental import pallas as pl
from jax.experimental.pallas import tpu as pltpu


def _round_up(x, m):
    return ((x + m - 1) // m) * m


def dqn_mlp_kernel(x_ref, w1_ref, w2_ref, w3_ref, b_ref, o_ref):
    h1_dim = w1_ref.shape[1]
    h2_dim = w2_ref.shape[1]
    n3_dim = w3_ref.shape[1]

    # Packed biases: row 0 = b1, row 1 = b2, row 2 = b3 (zero-padded lanes).
    b1 = b_ref[0:1, 0:h1_dim]      # (1, 256) f32
    b2 = b_ref[1:2, 0:h2_dim]      # (1, 64)  f32
    b3 = b_ref[2:3, 0:n3_dim]      # (1, 128) f32 (zeros beyond n_actions)

    # Layer 1: Linear + ReLU  (bf16 MXU matmul, f32 accumulate, f32 VPU epilogue)
    h1 = jnp.dot(x_ref[...].astype(jnp.bfloat16), w1_ref[...],
                 preferred_element_type=jnp.float32)
    h1 = jnp.maximum(h1 + b1, 0.0)

    # Layer 2: Linear + ReLU
    h2 = jnp.dot(h1.astype(jnp.bfloat16), w2_ref[...],
                 preferred_element_type=jnp.float32)
    h2 = jnp.maximum(h2 + b2, 0.0)

    # Layer 3: Linear (Q-values), lane-dense padded output store
    out = jnp.dot(h2.astype(jnp.bfloat16), w3_ref[...],
                  preferred_element_type=jnp.float32)
    o_ref[...] = (out + b3).astype(o_ref.dtype)


def dqn_forward(x, params, n_actions, tile_b=None):
    w1, w2, w3p, bias = params
    batch, s = x.shape
    h1_dim = w1.shape[1]
    h2_dim = w2.shape[1]
    n3_pad = w3p.shape[1]

    if tile_b is None:
        tile_b = min(512, _round_up(batch, 8))   # sublane-aligned batch tile
    batch_pad = _round_up(batch, tile_b)
    if batch_pad != batch:
        x = jnp.pad(x, ((0, batch_pad - batch), (0, 0)))

    grid = (batch_pad // tile_b,)
    flops = 2 * batch_pad * (s * h1_dim + h1_dim * h2_dim + h2_dim * n3_pad)
    bytes_accessed = (x.size * x.dtype.itemsize
                      + w1.size * w1.dtype.itemsize
                      + w2.size * w2.dtype.itemsize
                      + w3p.size * w3p.dtype.itemsize
                      + bias.size * bias.dtype.itemsize
                      + batch_pad * n3_pad * 4)

    out = pl.pallas_call(
        dqn_mlp_kernel,
        out_shape=jax.ShapeDtypeStruct((batch_pad, n3_pad), jnp.float32),
        grid_spec=pltpu.PrefetchScalarGridSpec(
            num_scalar_prefetch=0,
            grid=grid,
            in_specs=[
                pl.BlockSpec((tile_b, s), lambda i: (i, 0)),        # x: streamed per tile
                pl.BlockSpec((s, h1_dim), lambda i: (0, 0)),        # w1: VMEM-resident
                pl.BlockSpec((h1_dim, h2_dim), lambda i: (0, 0)),   # w2: VMEM-resident
                pl.BlockSpec((h2_dim, n3_pad), lambda i: (0, 0)),   # w3 (lane-padded)
                pl.BlockSpec(bias.shape, lambda i: (0, 0)),         # packed biases
            ],
            out_specs=pl.BlockSpec((tile_b, n3_pad), lambda i: (i, 0)),
        ),
        compiler_params=pltpu.CompilerParams(
            dimension_semantics=("parallel",)),
        cost_estimate=pl.CostEstimate(flops=flops, transcendentals=0,
                                      bytes_accessed=bytes_accessed),
    )(x, w1, w2, w3p, bias)
    # TODO(synk): for a per-env-step RL acting loop, pin weights across calls via the
    # cross-pallas_call prefetch pattern instead of re-DMA-ing them every call.
    return out[:batch, :n_actions]


def init_params(key, state_length, n_actions, h1=256, h2=64):
    """Mirrors the PyTorch layer shapes; weights (in,out) layout, bf16 weights,
    biases packed into one (8, 256) f32 buffer, w3/b3 lane-padded with zeros."""
    n3_pad = _round_up(max(n_actions, 1), 128)
    k1, k2, k3, k4, k5, k6 = jax.random.split(key, 6)

    def uniform(k, shape, fan_in):
        bound = 1.0 / jnp.sqrt(jnp.float32(fan_in))
        return jax.random.uniform(k, shape, jnp.float32, -bound, bound)

    w1 = uniform(k1, (state_length, h1), state_length).astype(jnp.bfloat16)
    w2 = uniform(k3, (h1, h2), h1).astype(jnp.bfloat16)
    w3 = uniform(k5, (h2, n_actions), h2)
    w3p = jnp.zeros((h2, n3_pad), jnp.float32).at[:, :n_actions].set(w3)
    w3p = w3p.astype(jnp.bfloat16)

    b1 = uniform(k2, (h1,), state_length)
    b2 = uniform(k4, (h2,), h1)
    b3 = uniform(k6, (n_actions,), h2)
    bw = max(h1, h2, n3_pad)
    bias = jnp.zeros((8, bw), jnp.float32)
    bias = bias.at[0, :h1].set(b1).at[1, :h2].set(b2).at[2, :n_actions].set(b3)

    return (w1, w2, w3p, bias)


def reference_forward(x, params, n_actions):
    """Pure-JAX reference with identical numerics (bf16 matmul inputs, f32 acc)."""
    w1, w2, w3p, bias = params
    b1 = bias[0:1, :w1.shape[1]]
    b2 = bias[1:2, :w2.shape[1]]
    b3 = bias[2:3, :w3p.shape[1]]
    h1 = jnp.maximum(
        jnp.dot(x.astype(jnp.bfloat16), w1, preferred_element_type=jnp.float32) + b1, 0.0)
    h2 = jnp.maximum(
        jnp.dot(h1.astype(jnp.bfloat16), w2, preferred_element_type=jnp.float32) + b2, 0.0)
    out = jnp.dot(h2.astype(jnp.bfloat16), w3p, preferred_element_type=jnp.float32) + b3
    return out[:, :n_actions]


if __name__ == "__main__":
    batch = 8
    state_length = 32
    n_actions = 4

    key = jax.random.PRNGKey(0)
    kx, kp = jax.random.split(key)
    x = jax.random.normal(kx, (batch, state_length), jnp.float32)
    params = init_params(kp, state_length, n_actions)

    out = dqn_forward(x, params, n_actions)
    out = jax.block_until_ready(out)

    ref = reference_forward(x, params, n_actions)
    assert out.shape == (batch, n_actions)
    assert jnp.allclose(out, ref, atol=1e-4, rtol=1e-4), float(jnp.max(jnp.abs(out - ref)))

    print("KERNEL_OK")
</pallas_src>

<mosaic_0001>
module attributes {stable_mosaic.version = 11 : i64} {
  func.func @dqn_mlp_kernel(%arg0: i32, %arg1: memref<8x32xf32, #tpu.memory_space<vmem>>, %arg2: memref<32x256xbf16, #tpu.memory_space<vmem>>, %arg3: memref<256x64xbf16, #tpu.memory_space<vmem>>, %arg4: memref<64x128xbf16, #tpu.memory_space<vmem>>, %arg5: memref<8x256xf32, #tpu.memory_space<vmem>>, %arg6: memref<8x128xf32, #tpu.memory_space<vmem>>) attributes {dimension_semantics = [#tpu.dimension_semantics<parallel>], iteration_bounds = array<i64: 1>, scalar_prefetch = 0 : i64, scratch_operands = 0 : i64, tpu.core_type = #tpu.core_type<tc>, window_params = [{transform_indices = @transform_0, window_bounds = array<i64: 8, 32>}, {pipeline_mode = #tpu.pipeline_mode<synchronous>, transform_indices = @transform_1, window_bounds = array<i64: 32, 256>}, {pipeline_mode = #tpu.pipeline_mode<synchronous>, transform_indices = @transform_2, window_bounds = array<i64: 256, 64>}, {pipeline_mode = #tpu.pipeline_mode<synchronous>, transform_indices = @transform_3, window_bounds = array<i64: 64, 128>}, {pipeline_mode = #tpu.pipeline_mode<synchronous>, transform_indices = @transform_4, window_bounds = array<i64: 8, 256>}, {transform_indices = @transform_5, window_bounds = array<i64: 8, 128>}]} {
    %c0 = arith.constant 0 : index
    %c0_0 = arith.constant 0 : index
    %0 = vector.load %arg5[%c0, %c0_0] : memref<8x256xf32, #tpu.memory_space<vmem>>, vector<1x256xf32>
    %c1 = arith.constant 1 : index
    %c0_1 = arith.constant 0 : index
    %1 = vector.load %arg5[%c1, %c0_1] : memref<8x256xf32, #tpu.memory_space<vmem>>, vector<1x64xf32>
    %c2 = arith.constant 2 : index
    %c0_2 = arith.constant 0 : index
    %2 = vector.load %arg5[%c2, %c0_2] : memref<8x256xf32, #tpu.memory_space<vmem>>, vector<1x128xf32>
    %c0_3 = arith.constant 0 : index
    %c0_4 = arith.constant 0 : index
    %3 = vector.load %arg1[%c0_3, %c0_4] : memref<8x32xf32, #tpu.memory_space<vmem>>, vector<8x32xf32>
    %4 = arith.truncf %3 : vector<8x32xf32> to vector<8x32xbf16>
    %c0_5 = arith.constant 0 : index
    %c0_6 = arith.constant 0 : index
    %5 = vector.load %arg2[%c0_5, %c0_6] : memref<32x256xbf16, #tpu.memory_space<vmem>>, vector<32x256xbf16>
    %cst = arith.constant dense<0.000000e+00> : vector<8x256xf32>
    %6 = tpu.matmul %4, %5, %cst {dimension_numbers = #tpu.dot_dimension_numbers<[1], [0], [0], [1], [0, 0, 1, 1], [], []>} : vector<8x32xbf16>, vector<32x256xbf16>, vector<8x256xf32> -> vector<8x256xf32>
    %7 = vector.broadcast %0 : vector<1x256xf32> to vector<8x256xf32>
    %8 = arith.addf %6, %7 : vector<8x256xf32>
    %cst_7 = arith.constant 0.000000e+00 : f32
    %9 = vector.broadcast %cst_7 : f32 to vector<8x256xf32>
    %10 = arith.maximumf %8, %9 : vector<8x256xf32>
    %11 = arith.truncf %10 : vector<8x256xf32> to vector<8x256xbf16>
    %c0_8 = arith.constant 0 : index
    %c0_9 = arith.constant 0 : index
    %12 = vector.load %arg3[%c0_8, %c0_9] : memref<256x64xbf16, #tpu.memory_space<vmem>>, vector<256x64xbf16>
    %cst_10 = arith.constant dense<0.000000e+00> : vector<8x64xf32>
    %13 = tpu.matmul %11, %12, %cst_10 {dimension_numbers = #tpu.dot_dimension_numbers<[1], [0], [0], [1], [0, 0, 1, 1], [], []>} : vector<8x256xbf16>, vector<256x64xbf16>, vector<8x64xf32> -> vector<8x64xf32>
    %14 = vector.broadcast %1 : vector<1x64xf32> to vector<8x64xf32>
    %15 = arith.addf %13, %14 : vector<8x64xf32>
    %cst_11 = arith.constant 0.000000e+00 : f32
    %16 = vector.broadcast %cst_11 : f32 to vector<8x64xf32>
    %17 = arith.maximumf %15, %16 : vector<8x64xf32>
    %18 = arith.truncf %17 : vector<8x64xf32> to vector<8x64xbf16>
    %c0_12 = arith.constant 0 : index
    %c0_13 = arith.constant 0 : index
    %19 = vector.load %arg4[%c0_12, %c0_13] : memref<64x128xbf16, #tpu.memory_space<vmem>>, vector<64x128xbf16>
    %cst_14 = arith.constant dense<0.000000e+00> : vector<8x128xf32>
    %20 = tpu.matmul %18, %19, %cst_14 {dimension_numbers = #tpu.dot_dimension_numbers<[1], [0], [0], [1], [0, 0, 1, 1], [], []>} : vector<8x64xbf16>, vector<64x128xbf16>, vector<8x128xf32> -> vector<8x128xf32>
    %21 = vector.broadcast %2 : vector<1x128xf32> to vector<8x128xf32>
    %22 = arith.addf %20, %21 : vector<8x128xf32>
    %c0_15 = arith.constant 0 : index
    %c0_16 = arith.constant 0 : index
    %23 = vector.load %arg6[%c0_15, %c0_16] : memref<8x128xf32, #tpu.memory_space<vmem>>, vector<8x128xf32>
    tpu.vector_store %arg6[%c0_15, %c0_16], %22 {strides = array<i32>} : memref<8x128xf32, #tpu.memory_space<vmem>>, vector<8x128xf32>,
    return
  }
  func.func @transform_0(%arg0: i32) -> (i32, i32) {
    %c0_i32 = arith.constant 0 : i32
    %c0_i32_0 = arith.constant 0 : i32
    return %arg0, %c0_i32 : i32, i32
  }
  func.func @transform_1(%arg0: i32) -> (i32, i32) {
    %c0_i32 = arith.constant 0 : i32
    %c0_i32_0 = arith.constant 0 : i32
    %c0_i32_1 = arith.constant 0 : i32
    return %c0_i32, %c0_i32_0 : i32, i32
  }
  func.func @transform_2(%arg0: i32) -> (i32, i32) {
    %c0_i32 = arith.constant 0 : i32
    %c0_i32_0 = arith.constant 0 : i32
    %c0_i32_1 = arith.constant 0 : i32
    return %c0_i32, %c0_i32_0 : i32, i32
  }
  func.func @transform_3(%arg0: i32) -> (i32, i32) {
    %c0_i32 = arith.constant 0 : i32
    %c0_i32_0 = arith.constant 0 : i32
    %c0_i32_1 = arith.constant 0 : i32
    return %c0_i32, %c0_i32_0 : i32, i32
  }
  func.func @transform_4(%arg0: i32) -> (i32, i32) {
    %c0_i32 = arith.constant 0 : i32
    %c0_i32_0 = arith.constant 0 : i32
    %c0_i32_1 = arith.constant 0 : i32
    return %c0_i32, %c0_i32_0 : i32, i32
  }
  func.func @transform_5(%arg0: i32) -> (i32, i32) {
    %c0_i32 = arith.constant 0 : i32
    %c0_i32_0 = arith.constant 0 : i32
    return %arg0, %c0_i32 : i32, i32
  }
}

</mosaic_0001>

<bundles_post_ra>
// kernel: tpu_custom_call.1
= control target key start
LH: loop header
LB: loop body
LE: loop exit
PB: predicated region body
PF: predicated region fallthrough
CT: control target
= control target key end

     0   :  { %v489_v2 = vmov 0   ;;  %vm62_vm0 = vcmask 261120   ;;  %s610_s0 = inlined_call_operand.vmem [shape: f32[8,32], index: 0, kind: input, shape index: {}]   ;;  %s611_s1 = inlined_call_operand.vmem [shape: bf16[32,256], index: 1, kind: input, shape index: {}]   ;;  %s612_s2 = inlined_call_operand.vmem [shape: bf16[256,64], index: 2, kind: input, shape index: {}]   ;;  %s613_s3 = inlined_call_operand.vmem [shape: bf16[64,128], index: 3, kind: input, shape index: {}]   ;;  %s614_s4 = inlined_call_operand.vmem [shape: f32[8,256], index: 4, kind: input, shape index: {}]   ;;  %s615_s5 = inlined_call_operand.hbm [shape: f32[8,128], index: 5, kind: output, shape index: {}]  }
   0x1   :  { %v441_v0 = vld [vmem:[%s611_s1 + $0x14] ss:$8 sps:$4 sm:$0xff]   ;;  %v443_v1 = vld [vmem:[%s611_s1 + $0x10] ss:$8 sps:$4 sm:$0xff]   ;;  %98 = vmatprep.mubr.bf16.mxu0 %v489_v2  ;;  %v444_v3 = vld [vmem:[%s611_s1 + $0x4] ss:$8 sps:$4 sm:$0xff]  }
   0x2   :  { %78 = vmatprep.subr.bf16.mxu0 %v441_v0  ;;  %v446_v4 = vld [vmem:[%s611_s1] ss:$8 sps:$4 sm:$0xff]   ;;  %v447_v6 = vld [vmem:[%s612_s2 + $0x78] sm:$0xff]   ;;  %v449_v8 = vld [vmem:[%s612_s2 + $0x70] sm:$0xff]  }
   0x3   :  { %v25_v5 = vld [vmem:[%s610_s0] sm:$0xff]  ;;  %79 = vmatpush1.bf16.msra.mxu0 %v443_v1  ;;  %v448_v7 = vld [vmem:[%s612_s2 + $0x38] sm:$0xff]   ;;  %398 = vmatprep.subr.bf16.mxu1 %v447_v6  ;;  %v450_v10 = vld [vmem:[%s612_s2 + $0x30] sm:$0xff]  }
   0x4   :  { %80 = vmatprep.subr.bf16.mxu0 %v444_v3  ;;  %v26_v9 = vpack.c.bf16 %v25_v5, %v25_v5  ;;  %399 = vmatpush3.bf16.msra.mxu1 %v448_v7  ;;  %v451_v11 = vld [vmem:[%s612_s2 + $0x68] sm:$0xff]   ;;  %v453_v13 = vld [vmem:[%s612_s2 + $0x60] sm:$0xff]   ;;  %v455_v15 = vld [vmem:[%s612_s2 + $0x58] sm:$0xff]  }
   0x5   :  { %400 = vmatprep.subr.bf16.mxu1 %v449_v8  ;;  %v452_v12 = vld [vmem:[%s612_s2 + $0x28] sm:$0xff]   ;;  %v454_v14 = vld [vmem:[%s612_s2 + $0x20] sm:$0xff]   ;;  %v456_v16 = vld [vmem:[%s612_s2 + $0x18] sm:$0xff]  }
   0x6   :  { %v457_v17 = vld [vmem:[%s612_s2 + $0x50] sm:$0xff]  }
   0x7   :  { %81 = vmatpush1.bf16.msra.mxu0 %v446_v4 }
   0x8   :  { %401 = vmatpush3.bf16.msra.mxu1 %v450_v10 }
   0x9   :  { %402 = vmatprep.subr.bf16.mxu1 %v451_v11 }
   0xa   :  { %376 = vmatmul.mubr.msk.bf16.vlgmr.msra.gmra.mxu0 %vm62_vm0, %v26_v9 }
   0xc   :  { %403 = vmatpush3.bf16.msra.mxu1 %v452_v12 }
   0xd   :  { %404 = vmatprep.subr.bf16.mxu1 %v453_v13 }
  0x10   :  { %405 = vmatpush3.bf16.msra.mxu1 %v454_v14 }
  0x11   :  { %406 = vmatprep.subr.bf16.mxu1 %v455_v15 }
  0x12   :  { %10 = vsyncpa [#allocation3], 0  ;;  %v458_v18 = vld [vmem:[%s612_s2 + $0x10] sm:$0xff]   ;;  %v459_v19 = vld [vmem:[%s612_s2 + $0x48] sm:$0xff]   ;;  %v490_v24 = vmov 0.0   ;;  %v32_v25 = vlaneseq  ;;  %vm491_vm1 = vmmov 0  }
  0x13   :  { %v460_v20 = vld [vmem:[%s612_s2 + $0x8] sm:$0xff]   ;;  %v461_v21 = vld [vmem:[%s612_s2 + $0x40] sm:$0xff]   ;;  %v463_v23 = vld [vmem:[%s613_s3 + $0x18] sm:$0xff]   ;;  %425 = vmatprep.subr.bf16.mxu0 %v490_v24  ;;  %433 = vmatprep.mubr.msk.bf16.mxu0 %vm491_vm1, %v490_v24  ;;  %vm313_vm2 = vcmask 523264  }
  0x14   :  { %407 = vmatpush3.bf16.msra.mxu1 %v456_v16  ;;  %v462_v22 = vld [vmem:[%s612_s2] sm:$0xff]   ;;  %426 = vmatpush3.bf16.msra.mxu0 %v463_v23  ;;  %v33_v26 = vshrl.u32 %v32_v25, 7  ;;  %v464_v42 = vld [vmem:[%s613_s3 + $0x10] sm:$0xff]   ;;  %v465_v43 = vld [vmem:[%s613_s3 + $0x8] sm:$0xff]  }
  0x15   :  { %408 = vmatprep.subr.bf16.mxu1 %v457_v17  ;;  %427 = vmatprep.subr.bf16.mxu0 %v490_v24  ;;  %v22_v28 = vld [vmem:[%s614_s4] ss:$8 sm:$0x3]  ;;  %v23_v46 = vld [vmem:[%s614_s4 + $0x1] ss:$0 sm:$0xff] }
  0x16   :  { %v34_v27 = vsub.s32 0, %v33_v26  ;;  %v38_v29 = vsub.s32 1, %v33_v26  ;;  %v466_v44 = vld [vmem:[%s613_s3] sm:$0xff]   ;;  %s492_s3 = smov [#allocation2]  }
  0x17   :  { %v24_v54 = vld [vmem:[%s614_s4 + $0x2] ss:$0 sm:$0xff]  ;;  %s364_s19 = sshll.u32 %s492_s3, 4  ;;  %s365_s19 = int_to_ptr.vmem [resolvable:$true] %s364_s19 }
  0x18   :  { %409 = vmatpush3.bf16.msra.mxu1 %v458_v18  ;;  %v35_v30 = vrot.slane %v22_v28, %v34_v27  ;;  %v39_v31 = vrot.slane %v22_v28, %v38_v29  ;;  %428 = vmatpush3.bf16.msra.mxu0 %v464_v42  ;;  %s467_s20 = scalar_lea.vmem %s365_s19, 128  ;;  %p472_p1 = scmp.lt.s32.totalorder %s365_s19, %s365_s19 }
  0x19   :  { %410 = vmatprep.subr.bf16.mxu1 %v459_v19  ;;  %429 = vmatprep.subr.bf16.mxu0 %v490_v24  ;;  %p468_p0 = scmp.ne.s32.totalorder %s365_s19, %s467_s20  ;;  %p473_p2 = scmp.lt.s32.totalorder %s467_s20, %s467_s20 }
  0x1b   :  { %p474_p3 = por %p473_p2, %p472_p1 }
  0x1c   :  { %411 = vmatpush3.bf16.msra.mxu1 %v460_v20  ;;  %430 = vmatpush3.bf16.msra.mxu0 %v465_v43 }
  0x1d   :  { %412 = vmatprep.subr.bf16.mxu1 %v461_v21  ;;  %431 = vmatprep.subr.bf16.mxu0 %v490_v24  ;;  %p475_p4 = pnand %p474_p3, %p468_p0 }
  0x20   :  { %413 = vmatpush3.bf16.msra.mxu1 %v462_v22  ;;  %432 = vmatpush3.bf16.msra.mxu0 %v466_v44 }
  0xca   :  { %v100_v32 = vpop.f32.mrf.mxu0 }
  0xcb   :  { %v101_v33 = vadd.f32 %v100_v32, %v35_v30 }
  0xcc   :  { %v102_v34 = vpop.f32.mrf.mxu0 }
  0xcd   :  { %v103_v35 = vadd.f32 %v102_v34, %v39_v31  ;;  %v107_v36 = vmax.f32 %v101_v33, 0.0 }
  0xce   :  { %v104_v37 = vpop.f32.mrf.mxu0 }
  0xcf   :  { %v108_v38 = vmax.f32 %v103_v35, 0.0  ;;  %v109_v41 = vpack.c.bf16 %v107_v36, %v107_v36 }
  0xd0   :  { %v105_v39 = vpop.f32.mrf.mxu0 }
  0xd1   :  { %v110_v40 = vpack.c.bf16 %v108_v38, %v108_v38 }
  0xd3   :  { %271 = vmatprep.mubr.bf16.mxu1 %v110_v40 }
  0xd4   :  { %272 = vmatmul.mubr.bf16.vlgmr.msra.gmra.mxu1 %v109_v41 }
 0x194   :  { %v414_v45 = vpop.f32.mrf.mxu1 }
 0x196   :  { %v415_v47 = vpop.f32.mrf.mxu1 }
 0x197   :  { %v416_v48 = vadd.f32 %v415_v47, %v414_v45 }
 0x198   :  { %v417_v49 = vpop.f32.mrf.mxu1 }
 0x199   :  { %v274_v50 = vadd.f32 %v416_v48, %v23_v46 }
 0x19a   :  { %v418_v51 = vpop.f32.mrf.mxu1 }
 0x19b   :  { %v279_v52 = vmax.f32 %v274_v50, 0.0 }
 0x19d   :  { %v280_v53 = vpack.c.bf16 %v279_v52, %v279_v52 }
 0x19f   :  { %434 = vmatmul.mubr.msk.bf16.vlgmr.msra.gmra.mxu0 %vm313_vm2, %v280_v53 }
 0x25f   :  { %v351_v55 = vpop.f32.mrf.mxu0 }
 0x260   :  { %v352_v56 = vadd.f32 %v351_v55, %v24_v54 }
 0x261   :  { %v435_v57 = vpop.f32.mrf.mxu0 }
 0x262   :  { %357 = vst [vmem:[#allocation2] sm:$0xff] %v352_v56 }
 0x263   :  { %v354_v58 = vpop.f32.mrf.mxu0 }
 0x264   :  { %478 = shalt.err (!%p475_p4)
}
 0x265   :  { %367 = dma.vmem_to_hbm [thread:$0]  %s365_s19, 128, %s615_s5, [#allocation3]   ;;  %v436_v59 = vpop.f32.mrf.mxu0 }
 0x266   :  { %487 = dma.done.wait [#allocation3], 128  }
 0x267   :  { %488 = vsyncadd [#allocation3], 4294967168 }
 0x268   :  { %371 = vsyncpa [#allocation3], 1 }

</bundles_post_ra>
